<compile_context>
chip_gen: v7x
topology: tpu7x:2x2x1
jax: 0.10.0
libtpu: 0.0.40
codegen_flags: <defaults>
</compile_context>

<pallas_src>
import jax
import jax.numpy as jnp
from jax.experimental import pallas as pl
from jax.experimental.pallas import tpu as pltpu

_MiB = 1024 * 1024


def _round_up(a: int, b: int) -> int:
    return ((a + b - 1) // b) * b


# ---------------------------------------------------------------------------
# Hardware config / planning
# ---------------------------------------------------------------------------

def _hw_config():
    kind = ""
    try:
        kind = jax.devices()[0].device_kind.lower()
    except Exception:
        pass
    vmem_cap = None
    try:
        vmem_cap = int(pltpu.get_tpu_info().vmem_capacity_bytes)
    except Exception:
        vmem_cap = None
    is_v7 = ("v7" in kind) or (vmem_cap is not None and vmem_cap <= 80 * _MiB)
    small_mxu = any(t in kind for t in ("v2", "v3", "v4", "v5"))
    if vmem_cap is None:
        vmem_cap = (64 if is_v7 else 128) * _MiB
    return {
        "kind": kind,
        "vmem_cap": vmem_cap,
        # ~40 MiB on v7x (64 MiB/TC), ~96 MiB on 128-MiB-VMEM generations.
        "vmem_budget": (40 if is_v7 else 96) * _MiB,
        "mxu_align": 128 if small_mxu else 256,   # 256x256 MXU on v6e/v7x
        "tm": 128 if small_mxu else 256,
        "num_tc": 2 if is_v7 else 1,
    }


def _vmem_estimate(TM, TH, E_p, O_p, x_item, out_item, cb):
    """Conservative per-step VMEM footprint (double-buffered streams + live values)."""
    return (2 * TM * E_p * x_item          # x tiles (double-buffered, native dtype)
            + 2 * E_p * TH * cb            # w1 block
            + 2 * TH * O_p * cb            # w2 block
            + 2 * 8 * (TH + O_p) * 4       # bias blocks (sublane-padded, f32)
            + 2 * TM * O_p * out_item      # out tiles
            + TM * O_p * 4                 # f32 accumulator scratch
            + TM * E_p * cb                # compute-dtype cast of the x tile
            + TM * TH * (4 + cb)           # live hidden activation (f32 + cast)
            + TM * O_p * 4)                # live second-dot result (f32)


def make_plan(embed_dim, hidden_dim, out_dim, compute_dtype,
              x_itemsize=4, out_itemsize=4, hw=None):
    """Shape-only planning (independent of M): padded dims + hidden tile size."""
    hw = dict(_hw_config() if hw is None else hw)
    cb = jnp.dtype(compute_dtype).itemsize
    k_align = hw["mxu_align"]
    TM = hw["tm"]
    E_p = _round_up(embed_dim, k_align)
    O_p = _round_up(out_dim, 128)                 # lane dim: 128 is sufficient
    H_full = _round_up(hidden_dim, k_align)
    budget = hw["vmem_budget"]

    # Prefer full weight residency (TH == H_p, single hidden grid step); otherwise
    # pick the largest hidden chunk that fits the per-generation VMEM budget.
    candidates = [H_full] + [t for t in (4096, 2048, 1024, 512, 256, 128) if t < H_full]
    TH, H_p = candidates[-1], _round_up(hidden_dim, candidates[-1])
    for t in candidates:
        if _vmem_estimate(TM, t, E_p, O_p, x_itemsize, out_itemsize, cb) + 8 * _MiB <= budget:
            TH, H_p = t, _round_up(hidden_dim, t)
            break

    return {
        "hw": hw,
        "compute_dtype": jnp.dtype(compute_dtype),
        "E": embed_dim, "H": hidden_dim, "O": out_dim,
        "E_p": E_p, "H_p": H_p, "O_p": O_p,
        "TH": TH, "TM": TM,
    }


def pack_params(w1, b1, w2, b2, plan):
    """One-time pad + cast of weights/biases (hoisted out of the forward pass)."""
    E, H, O = plan["E"], plan["H"], plan["O"]
    E_p, H_p, O_p = plan["E_p"], plan["H_p"], plan["O_p"]
    cd = plan["compute_dtype"]
    w1_p = jnp.pad(w1, ((0, E_p - E), (0, H_p - H))).astype(cd)
    w2_p = jnp.pad(w2, ((0, H_p - H), (0, O_p - O))).astype(cd)
    b1_p = jnp.pad(b1.reshape(1, -1), ((0, 0), (0, H_p - H))).astype(jnp.float32)
    b2_p = jnp.pad(b2.reshape(1, -1), ((0, 0), (0, O_p - O))).astype(jnp.float32)
    return w1_p, b1_p, w2_p, b2_p


# ---------------------------------------------------------------------------
# Kernels
# ---------------------------------------------------------------------------

def mlp_kernel_resident(x_ref, w1_ref, b1_ref, w2_ref, b2_ref, o_ref):
    """Weights fully VMEM-resident (hidden grid axis collapsed): no scratch, direct write."""
    x = x_ref[...].astype(w1_ref.dtype)
    h = jnp.dot(x, w1_ref[...], preferred_element_type=jnp.float32)
    h = jnp.maximum(h + b1_ref[...], 0.0)          # bias + ReLU in f32
    # TODO(synk): nn.Dropout is identity in eval mode; training-mode dropout (PyTorch
    # RNG semantics) is not reproduced here.
    y = jnp.dot(h.astype(w2_ref.dtype), w2_ref[...], preferred_element_type=jnp.float32)
    o_ref[...] = (y + b2_ref[...]).astype(o_ref.dtype)


def mlp_kernel_chunked(x_ref, w1_ref, b1_ref, w2_ref, b2_ref, o_ref, acc_ref):
    """Hidden dim chunked (grid axis 1, 'arbitrary'), f32 VMEM accumulator."""
    hk = pl.program_id(1)

    @pl.when(hk == 0)
    def _init():
        acc_ref[...] = jnp.zeros_like(acc_ref)

    x = x_ref[...].astype(w1_ref.dtype)
    h = jnp.dot(x, w1_ref[...], preferred_element_type=jnp.float32)
    h = jnp.maximum(h + b1_ref[...], 0.0)
    acc_ref[...] += jnp.dot(h.astype(w2_ref.dtype), w2_ref[...],
                            preferred_element_type=jnp.float32)

    @pl.when(hk == pl.num_programs(1) - 1)
    def _finalize():
        o_ref[...] = (acc_ref[...] + b2_ref[...]).astype(o_ref.dtype)


# ---------------------------------------------------------------------------
# Forward wrapper (weights already packed/padded)
# ---------------------------------------------------------------------------

def mlp_forward_packed(x, w1_p, b1_p, w2_p, b2_p, plan):
    """x: [M, E] (native dtype)  packed params per `plan`  ->  [M, O] in x.dtype."""
    M, E = x.shape
    assert E == plan["E"], "input feature dim mismatch"
    hw = plan["hw"]
    E_p, H_p, O_p, TH = plan["E_p"], plan["H_p"], plan["O_p"], plan["TH"]
    out_dtype = x.dtype
    cb = jnp.dtype(plan["compute_dtype"]).itemsize
    x_item = jnp.dtype(x.dtype).itemsize
    out_item = jnp.dtype(out_dtype).itemsize

    TM = min(plan["TM"], max(128, _round_up(M, 128)))
    m_mult = TM * (2 if hw["num_tc"] >= 2 else 1)   # even M-tile count on 2-TC chips
    M_p = _round_up(M, m_mult)

    # Pad x (keeping native dtype) only when needed; fast path otherwise.
    x_in = x if (M_p, E_p) == (M, E) else jnp.pad(x, ((0, M_p - M), (0, E_p - E)))

    grid_m = M_p // TM
    grid_h = H_p // TH

    est = _vmem_estimate(TM, TH, E_p, O_p, x_item, out_item, cb)
    vmem_limit = int(max(16 * _MiB, min(hw["vmem_budget"], est + 8 * _MiB)))

    # Accurate HBM traffic: weights are re-streamed per M tile only when H is chunked.
    weight_reads = 1 if grid_h == 1 else grid_m
    cost = pl.CostEstimate(
        flops=2 * M_p * H_p * (E_p + O_p),
        transcendentals=0,
        bytes_accessed=int(M_p * E_p * x_item
                           + weight_reads * (E_p * H_p + H_p * O_p) * cb
                           + weight_reads * (H_p + O_p) * 4
                           + M_p * O_p * out_item),
    )

    if grid_h == 1:
        kernel = mlp_kernel_resident
        grid = (grid_m,)
        in_specs = [
            pl.BlockSpec((TM, E_p), lambda i: (i, 0)),     # x tile streams over M
            pl.BlockSpec((E_p, H_p), lambda i: (0, 0)),    # w1 resident (fetched once)
            pl.BlockSpec((1, H_p), lambda i: (0, 0)),      # b1 resident
            pl.BlockSpec((H_p, O_p), lambda i: (0, 0)),    # w2 resident
            pl.BlockSpec((1, O_p), lambda i: (0, 0)),      # b2 resident
        ]
        out_specs = pl.BlockSpec((TM, O_p), lambda i: (i, 0))
        scratch_shapes = ()
        dims = ("parallel",)
    else:
        kernel = mlp_kernel_chunked
        grid = (grid_m, grid_h)
        in_specs = [
            pl.BlockSpec((TM, E_p), lambda i, k: (i, 0)),  # x tile (constant over k)
            pl.BlockSpec((E_p, TH), lambda i, k: (0, k)),  # w1 chunk
            pl.BlockSpec((1, TH), lambda i, k: (0, k)),    # b1 chunk
            pl.BlockSpec((TH, O_p), lambda i, k: (k, 0)),  # w2 chunk
            pl.BlockSpec((1, O_p), lambda i, k: (0, 0)),   # b2 resident
        ]
        out_specs = pl.BlockSpec((TM, O_p), lambda i, k: (i, 0))
        scratch_shapes = (pltpu.VMEM((TM, O_p), jnp.float32),)
        dims = ("parallel", "arbitrary")

    out_p = pl.pallas_call(
        kernel,
        out_shape=jax.ShapeDtypeStruct((M_p, O_p), out_dtype),
        grid_spec=pltpu.PrefetchScalarGridSpec(
            num_scalar_prefetch=0,
            grid=grid,
            in_specs=in_specs,
            out_specs=out_specs,
            scratch_shapes=scratch_shapes,
        ),
        compiler_params=pltpu.CompilerParams(
            dimension_semantics=dims,
            vmem_limit_bytes=vmem_limit,
        ),
        cost_estimate=cost,
    )(x_in, w1_p, b1_p, w2_p, b2_p)

    if M_p == M and O_p == plan["O"]:
        return out_p
    return out_p[:M, :plan["O"]]


# ---------------------------------------------------------------------------
# Module-equivalent wrapper (eval mode)
# ---------------------------------------------------------------------------

class MLPPallas:
    """Eval-mode equivalent of the PyTorch MLP (Linear -> ReLU -> Dropout -> Linear)."""

    def __init__(self, embed_dim: int, out_dim: int, hidden_dim: int, dropout: float,
                 key, compute_dtype=jnp.bfloat16):
        self.embed_dim, self.out_dim, self.hidden_dim = embed_dim, out_dim, hidden_dim
        self.dropout = dropout                    # eval mode: identity
        self.compute_dtype = jnp.dtype(compute_dtype)
        k1, k2, k3, k4 = jax.random.split(key, 4)
        lim1 = 1.0 / (embed_dim ** 0.5)
        lim2 = 1.0 / (hidden_dim ** 0.5)
        self.w1 = jax.random.uniform(k1, (embed_dim, hidden_dim), jnp.float32, -lim1, lim1)
        self.b1 = jax.random.uniform(k2, (1, hidden_dim), jnp.float32, -lim1, lim1)
        self.w2 = jax.random.uniform(k3, (hidden_dim, out_dim), jnp.float32, -lim2, lim2)
        self.b2 = jax.random.uniform(k4, (1, out_dim), jnp.float32, -lim2, lim2)
        self._hw = _hw_config()
        self._plans, self._packed = {}, {}
        self._prepare(self.compute_dtype)         # hoisted pad + cast: done once

    def _prepare(self, dtype):
        dtype = jnp.dtype(dtype)
        if dtype not in self._packed:
            plan = make_plan(self.embed_dim, self.hidden_dim, self.out_dim, dtype, hw=self._hw)
            packed = tuple(jax.block_until_ready(p) for p in
                           pack_params(self.w1, self.b1, self.w2, self.b2, plan))
            self._plans[dtype] = plan
            self._packed[dtype] = packed
        return self._plans[dtype], self._packed[dtype]

    def __call__(self, x, compute_dtype=None):
        dtype = self.compute_dtype if compute_dtype is None else jnp.dtype(compute_dtype)
        plan, packed = self._prepare(dtype)
        lead = x.shape[:-1]
        x2d = x.reshape(-1, x.shape[-1])
        y2d = mlp_forward_packed(x2d, *packed, plan=plan)
        return y2d.reshape(*lead, y2d.shape[-1])


if __name__ == "__main__":
    key = jax.random.PRNGKey(0)
    kx, kp = jax.random.split(key)

    batch, seq = 2, 8
    embed_dim, hidden_dim, out_dim = 32, 64, 16

    x = jax.random.normal(kx, (batch, seq, embed_dim), jnp.float32)
    model = MLPPallas(embed_dim, out_dim, hidden_dim, dropout=0.1, key=kp)

    # bf16-MXU path (default, weight-resident) and pure-f32 verification path.
    out_bf16 = jax.block_until_ready(model(x))
    out_f32 = jax.block_until_ready(model(x, compute_dtype=jnp.float32))

    # Reference in plain JAX (eval-mode MLP, f32).
    ref = jnp.maximum(x.reshape(-1, embed_dim) @ model.w1 + model.b1, 0.0) @ model.w2 + model.b2
    ref = ref.reshape(batch, seq, out_dim)

    assert out_bf16.shape == (batch, seq, out_dim)
    assert out_f32.shape == (batch, seq, out_dim)
    assert jnp.allclose(out_f32, ref, atol=1e-5, rtol=1e-5), "f32 path mismatch"
    assert jnp.allclose(out_bf16, ref, atol=5e-2, rtol=5e-2), "bf16 path mismatch"

    # Also exercise the H-chunked accumulator fallback path at tiny shapes.
    hidden2 = 256
    k5, k6 = jax.random.split(kp)
    w1b = jax.random.uniform(k5, (embed_dim, hidden2), jnp.float32, -0.1, 0.1)
    w2b = jax.random.uniform(k6, (hidden2, out_dim), jnp.float32, -0.1, 0.1)
    b1b = jnp.zeros((1, hidden2), jnp.float32)
    b2b = jnp.zeros((1, out_dim), jnp.float32)
    plan_c = make_plan(embed_dim, hidden2, out_dim, jnp.float32, hw=_hw_config())
    plan_c["TH"] = 128                              # force grid_h == 2
    plan_c["H_p"] = _round_up(hidden2, 128)
    packed_c = pack_params(w1b, b1b, w2b, b2b, plan_c)
    y_c = jax.block_until_ready(
        mlp_forward_packed(x.reshape(-1, embed_dim), *packed_c, plan=plan_c))
    ref_c = jnp.maximum(x.reshape(-1, embed_dim) @ w1b + b1b, 0.0) @ w2b + b2b
    assert jnp.allclose(y_c, ref_c, atol=1e-4, rtol=1e-4), "chunked path mismatch"

    print("KERNEL_OK")
</pallas_src>

<mosaic_0001>
module attributes {stable_mosaic.version = 11 : i64} {
  func.func @mlp_kernel_resident(%arg0: i32, %arg1: memref<128x256xf32, #tpu.memory_space<vmem>>, %arg2: memref<256x256xbf16, #tpu.memory_space<vmem>>, %arg3: memref<1x256xf32, #tpu.memory_space<vmem>>, %arg4: memref<256x128xbf16, #tpu.memory_space<vmem>>, %arg5: memref<1x128xf32, #tpu.memory_space<vmem>>, %arg6: memref<128x128xf32, #tpu.memory_space<vmem>>) attributes {dimension_semantics = [#tpu.dimension_semantics<parallel>], iteration_bounds = array<i64: 1>, scalar_prefetch = 0 : i64, scratch_operands = 0 : i64, tpu.core_type = #tpu.core_type<tc>, window_params = [{transform_indices = @transform_0, window_bounds = array<i64: 128, 256>}, {pipeline_mode = #tpu.pipeline_mode<synchronous>, transform_indices = @transform_1, window_bounds = array<i64: 256, 256>}, {pipeline_mode = #tpu.pipeline_mode<synchronous>, transform_indices = @transform_2, window_bounds = array<i64: 1, 256>}, {pipeline_mode = #tpu.pipeline_mode<synchronous>, transform_indices = @transform_3, window_bounds = array<i64: 256, 128>}, {pipeline_mode = #tpu.pipeline_mode<synchronous>, transform_indices = @transform_4, window_bounds = array<i64: 1, 128>}, {transform_indices = @transform_5, window_bounds = array<i64: 128, 128>}]} {
    %c0 = arith.constant 0 : index
    %c0_0 = arith.constant 0 : index
    %0 = vector.load %arg1[%c0, %c0_0] : memref<128x256xf32, #tpu.memory_space<vmem>>, vector<128x256xf32>
    %1 = arith.truncf %0 : vector<128x256xf32> to vector<128x256xbf16>
    %c0_1 = arith.constant 0 : index
    %c0_2 = arith.constant 0 : index
    %2 = vector.load %arg2[%c0_1, %c0_2] : memref<256x256xbf16, #tpu.memory_space<vmem>>, vector<256x256xbf16>
    %cst = arith.constant dense<0.000000e+00> : vector<128x256xf32>
    %3 = tpu.matmul %1, %2, %cst {dimension_numbers = #tpu.dot_dimension_numbers<[1], [0], [0], [1], [0, 0, 1, 1], [], []>} : vector<128x256xbf16>, vector<256x256xbf16>, vector<128x256xf32> -> vector<128x256xf32>
    %c0_3 = arith.constant 0 : index
    %c0_4 = arith.constant 0 : index
    %4 = vector.load %arg3[%c0_3, %c0_4] : memref<1x256xf32, #tpu.memory_space<vmem>>, vector<1x256xf32>
    %5 = vector.broadcast %4 : vector<1x256xf32> to vector<128x256xf32>
    %6 = arith.addf %3, %5 : vector<128x256xf32>
    %cst_5 = arith.constant 0.000000e+00 : f32
    %7 = vector.broadcast %cst_5 : f32 to vector<128x256xf32>
    %8 = arith.maximumf %6, %7 : vector<128x256xf32>
    %9 = arith.truncf %8 : vector<128x256xf32> to vector<128x256xbf16>
    %c0_6 = arith.constant 0 : index
    %c0_7 = arith.constant 0 : index
    %10 = vector.load %arg4[%c0_6, %c0_7] : memref<256x128xbf16, #tpu.memory_space<vmem>>, vector<256x128xbf16>
    %cst_8 = arith.constant dense<0.000000e+00> : vector<128x128xf32>
    %11 = tpu.matmul %9, %10, %cst_8 {dimension_numbers = #tpu.dot_dimension_numbers<[1], [0], [0], [1], [0, 0, 1, 1], [], []>} : vector<128x256xbf16>, vector<256x128xbf16>, vector<128x128xf32> -> vector<128x128xf32>
    %c0_9 = arith.constant 0 : index
    %c0_10 = arith.constant 0 : index
    %12 = vector.load %arg5[%c0_9, %c0_10] : memref<1x128xf32, #tpu.memory_space<vmem>>, vector<1x128xf32>
    %13 = vector.broadcast %12 : vector<1x128xf32> to vector<128x128xf32>
    %14 = arith.addf %11, %13 : vector<128x128xf32>
    %c0_11 = arith.constant 0 : index
    %c0_12 = arith.constant 0 : index
    %15 = vector.load %arg6[%c0_11, %c0_12] : memref<128x128xf32, #tpu.memory_space<vmem>>, vector<128x128xf32>
    tpu.vector_store %arg6[%c0_11, %c0_12], %14 {strides = array<i32>} : memref<128x128xf32, #tpu.memory_space<vmem>>, vector<128x128xf32>,
    return
  }
  func.func @transform_0(%arg0: i32) -> (i32, i32) {
    %c0_i32 = arith.constant 0 : i32
    %c0_i32_0 = arith.constant 0 : i32
    return %arg0, %c0_i32 : i32, i32
  }
  func.func @transform_1(%arg0: i32) -> (i32, i32) {
    %c0_i32 = arith.constant 0 : i32
    %c0_i32_0 = arith.constant 0 : i32
    %c0_i32_1 = arith.constant 0 : i32
    return %c0_i32, %c0_i32_0 : i32, i32
  }
  func.func @transform_2(%arg0: i32) -> (i32, i32) {
    %c0_i32 = arith.constant 0 : i32
    %c0_i32_0 = arith.constant 0 : i32
    %c0_i32_1 = arith.constant 0 : i32
    return %c0_i32, %c0_i32_0 : i32, i32
  }
  func.func @transform_3(%arg0: i32) -> (i32, i32) {
    %c0_i32 = arith.constant 0 : i32
    %c0_i32_0 = arith.constant 0 : i32
    %c0_i32_1 = arith.constant 0 : i32
    return %c0_i32, %c0_i32_0 : i32, i32
  }
  func.func @transform_4(%arg0: i32) -> (i32, i32) {
    %c0_i32 = arith.constant 0 : i32
    %c0_i32_0 = arith.constant 0 : i32
    %c0_i32_1 = arith.constant 0 : i32
    return %c0_i32, %c0_i32_0 : i32, i32
  }
  func.func @transform_5(%arg0: i32) -> (i32, i32) {
    %c0_i32 = arith.constant 0 : i32
    %c0_i32_0 = arith.constant 0 : i32
    return %arg0, %c0_i32 : i32, i32
  }
}

</mosaic_0001>

<bundles_post_ra>
// kernel: tpu_custom_call.1
= control target key start
LH: loop header
LB: loop body
LE: loop exit
PB: predicated region body
PF: predicated region fallthrough
CT: control target
= control target key end

     0   :  { %10 = vsyncpa [#allocation3], 0  ;;  %s1177_s0 = inlined_call_operand.hbm [shape: f32[128,256], index: 0, kind: input, shape index: {}]   ;;  %s1178_s1 = inlined_call_operand.hbm [shape: bf16[256,256], index: 1, kind: input, shape index: {}]   ;;  %s1179_s2 = inlined_call_operand.vmem [shape: f32[1,256], index: 2, kind: input, shape index: {}]   ;;  %s1180_s3 = inlined_call_operand.hbm [shape: bf16[256,128], index: 3, kind: input, shape index: {}]   ;;  %s1181_s4 = inlined_call_operand.vmem [shape: f32[1,128], index: 4, kind: input, shape index: {}]   ;;  %s1182_s5 = inlined_call_operand.hbm [shape: f32[128,128], index: 5, kind: output, shape index: {}]  }
   0x1   :  { %11 = vsyncpa [#allocation6], 0 }
   0x2   :  { %12 = vsyncpa [#allocation4], 0  ;;  %s1023_s18 = smov [#allocation5]   ;;  %s929_s22 = scalar_lea.hbm %s1178_s1, 4096 }
   0x3   :  { %s30_s19 = sshll.u32 %s1023_s18, 4  ;;  %p930_p0 = scmp.ne.s32.totalorder %s1178_s1, %s929_s22  ;;  %s31_s19 = int_to_ptr.vmem [resolvable:$true] %s30_s19 }
   0x4   :  { %p933_p1 = scmp.lt.u32.totalorder %s929_s22, %s1178_s1 }
   0x6   :  { %p935_p2 = pnand %p933_p1, %p930_p0 }
   0x8   :  { %938 = shalt.err (!%p935_p2)
}
   0x9   :  { %s939_s27 = scalar_lea.vmem %s31_s19, 4096  ;;  %p944_p4 = scmp.lt.s32.totalorder %s31_s19, %s31_s19 }
   0xa   :  { %p940_p3 = scmp.ne.s32.totalorder %s31_s19, %s939_s27  ;;  %p945_p5 = scmp.lt.s32.totalorder %s939_s27, %s939_s27 }
   0xc   :  { %p946_p6 = por %p945_p5, %p944_p4 }
   0xe   :  { %p947_p7 = pnand %p946_p6, %p940_p3 }
  0x10   :  { %950 = shalt.err (!%p947_p7)
}
  0x11   :  { %s1024_s28 = smov 128   ;;  %s1025_s29 = smov 8  }
  0x12   :  { %36 = dma.hbm_to_vmem [thread:$0]  %s1178_s1, 4096, %s31_s19, [#allocation6], %s1024_s28, %s1024_s28, %s1025_s29  }
  0x13   :  { %s1026_s7 = smov [#allocation2]   ;;  %s951_s11 = scalar_lea.hbm %s1177_s0, 4096 }
  0x14   :  { %s18_s8 = sshll.u32 %s1026_s7, 4  ;;  %p952_p8 = scmp.ne.s32.totalorder %s1177_s0, %s951_s11  ;;  %s19_s8 = int_to_ptr.vmem [resolvable:$true] %s18_s8 }
  0x15   :  { %p955_p9 = scmp.lt.u32.totalorder %s951_s11, %s1177_s0 }
  0x17   :  { %p957_p10 = pnand %p955_p9, %p952_p8 }
  0x19   :  { %960 = shalt.err (!%p957_p10)
}
  0x1a   :  { %s961_s16 = scalar_lea.vmem %s19_s8, 4096  ;;  %p966_p12 = scmp.lt.s32.totalorder %s19_s8, %s19_s8 }
  0x1b   :  { %p962_p11 = scmp.ne.s32.totalorder %s19_s8, %s961_s16  ;;  %p967_p13 = scmp.lt.s32.totalorder %s961_s16, %s961_s16 }
  0x1d   :  { %p968_p0 = por %p967_p13, %p966_p12 }
  0x1f   :  { %p969_p1 = pnand %p968_p0, %p962_p11 }
  0x21   :  { %972 = shalt.err (!%p969_p1)
}
  0x22   :  { %s1027_s1 = smov 256   ;;  %s1028_s17 = smov 16  }
  0x23   :  { %24 = dma.hbm_to_vmem [thread:$0]  %s1177_s0, 4096, %s19_s8, [#allocation3], %s1027_s1, %s1027_s1, %s1028_s17  }
  0x24   :  { %s1029_s20 = smov [#allocation7]   ;;  %s973_s24 = scalar_lea.hbm %s1180_s3, 2048 }
  0x25   :  { %s44_s21 = sshll.u32 %s1029_s20, 4  ;;  %p974_p2 = scmp.ne.s32.totalorder %s1180_s3, %s973_s24  ;;  %s45_s21 = int_to_ptr.vmem [resolvable:$true] %s44_s21 }
  0x26   :  { %p977_p3 = scmp.lt.u32.totalorder %s973_s24, %s1180_s3 }
  0x28   :  { %p979_p4 = pnand %p977_p3, %p974_p2 }
  0x2a   :  { %982 = shalt.err (!%p979_p4)
}
  0x2b   :  { %s983_s6 = scalar_lea.vmem %s45_s21, 2048  ;;  %p988_p6 = scmp.lt.s32.totalorder %s45_s21, %s45_s21 }
  0x2c   :  { %p984_p5 = scmp.ne.s32.totalorder %s45_s21, %s983_s6  ;;  %p989_p7 = scmp.lt.s32.totalorder %s983_s6, %s983_s6 }
  0x2e   :  { %p990_p8 = por %p989_p7, %p988_p6 }
  0x30   :  { %p991_p9 = pnand %p990_p8, %p984_p5 }
  0x32   :  { %994 = shalt.err (!%p991_p9)
}
  0x33   :  { %s1030_s0 = smov 64   ;;  %s1031_s7 = smov 4  }
  0x34   :  { %50 = dma.hbm_to_vmem [thread:$0]  %s1180_s3, 2048, %s45_s21, [#allocation6], %s1030_s0, %s1030_s0, %s1031_s7  }
  0x35   :  { %1017 = dma.done.wait [#allocation3], 4096  }
  0x36   :  { %1018 = vsyncadd [#allocation3], 4294963200 }
  0x37   :  { %1019 = dma.done.wait [#allocation6], 6144  }
  0x38   :  { %1020 = vsyncadd [#allocation6], 4294961152  ;;  %v865_v0 = vld [vmem:[#allocation5 + $0x4] ss:$8 sps:$4 sm:$0xff]   ;;  %v867_v1 = vld [vmem:[#allocation5] ss:$8 sps:$4 sm:$0xff]  }
  0x39   :  { %315 = vmatprep.subr.bf16.mxu0 %v865_v0  ;;  %v868_v2 = vld [vmem:[#allocation5 + $0x14] ss:$8 sps:$4 sm:$0xff]   ;;  %v870_v3 = vld [vmem:[#allocation5 + $0x10] ss:$8 sps:$4 sm:$0xff]   ;;  %v871_v4 = vld [vmem:[#allocation5 + $0x24] ss:$8 sps:$4 sm:$0xff]  }
  0x3a   :  { %316 = vmatpush1.bf16.msra.mxu0 %v867_v1  ;;  %v873_v5 = vld [vmem:[#allocation5 + $0x20] ss:$8 sps:$4 sm:$0xff]   ;;  %v874_v6 = vld [vmem:[#allocation5 + $0x34] ss:$8 sps:$4 sm:$0xff]   ;;  %v876_v7 = vld [vmem:[#allocation5 + $0x30] ss:$8 sps:$4 sm:$0xff]  }
  0x3b   :  { %317 = vmatprep.subr.bf16.mxu0 %v868_v2  ;;  %v877_v8 = vld [vmem:[#allocation5 + $0x44] ss:$8 sps:$4 sm:$0xff]   ;;  %v879_v9 = vld [vmem:[#allocation5 + $0x40] ss:$8 sps:$4 sm:$0xff]   ;;  %v880_v10 = vld [vmem:[#allocation5 + $0x54] ss:$8 sps:$4 sm:$0xff]  }
  0x3c   :  { %v882_v11 = vld [vmem:[#allocation5 + $0x50] ss:$8 sps:$4 sm:$0xff]   ;;  %v883_v12 = vld [vmem:[#allocation5 + $0x64] ss:$8 sps:$4 sm:$0xff]   ;;  %v885_v16 = vld [vmem:[#allocation5 + $0x60] ss:$8 sps:$4 sm:$0xff]  }
  0x3d   :  { %v64_v13 = vld [vmem:[#allocation2 + $0x8] sm:$0xff]  ;;  %v66_v14 = vld [vmem:[#allocation2 + $0x18] sm:$0xff]  ;;  %v913_v22 = vld [vmem:[#allocation7 + $0x40] sm:$0xff]  }
  0x3e   :  { %318 = vmatpush1.bf16.msra.mxu0 %v870_v3  ;;  %v96_v15 = vpack.c.bf16 %v66_v14, %v64_v13  ;;  %v886_v17 = vld [vmem:[#allocation5 + $0x74] ss:$8 sps:$4 sm:$0xff]   ;;  %v888_v18 = vld [vmem:[#allocation5 + $0x70] ss:$8 sps:$4 sm:$0xff]   ;;  %v889_v19 = vld [vmem:[#allocation5 + $0x84] ss:$8 sps:$4 sm:$0xff]   ;;  %791 = vmatprep.subr.bf16.mxu1 %v913_v22 }
  0x3f   :  { %319 = vmatprep.subr.bf16.mxu0 %v871_v4  ;;  %v891_v20 = vld [vmem:[#allocation5 + $0x80] ss:$8 sps:$4 sm:$0xff]   ;;  %v892_v21 = vld [vmem:[#allocation5 + $0x94] ss:$8 sps:$4 sm:$0xff]   ;;  %v894_v23 = vld [vmem:[#allocation5 + $0x90] ss:$8 sps:$4 sm:$0xff]  }
  0x40   :  { %347 = vmatprep.mubr.bf16.mxu0 %v96_v15  ;;  %v914_v24 = vld [vmem:[#allocation7] sm:$0xff]   ;;  %v915_v26 = vld [vmem:[#allocation7 + $0x48] sm:$0xff]   ;;  %v917_v28 = vld [vmem:[#allocation7 + $0x50] sm:$0xff]  }
  0x41   :  { %v895_v25 = vld [vmem:[#allocation5 + $0xa4] ss:$8 sps:$4 sm:$0xff]   ;;  %792 = vmatpush3.bf16.msra.mxu1 %v914_v24  ;;  %v897_v29 = vld [vmem:[#allocation5 + $0xa0] ss:$8 sps:$4 sm:$0xff]   ;;  %v898_v30 = vld [vmem:[#allocation5 + $0xb4] ss:$8 sps:$4 sm:$0xff]  }
  0x42   :  { %320 = vmatpush1.bf16.msra.mxu0 %v873_v5  ;;  %v916_v27 = vld [vmem:[#allocation7 + $0x8] sm:$0xff]   ;;  %793 = vmatprep.subr.bf16.mxu1 %v915_v26  ;;  %v918_v31 = vld [vmem:[#allocation7 + $0x10] sm:$0xff]   ;;  %v919_v32 = vld [vmem:[#allocation7 + $0x58] sm:$0xff]  }
  0x43   :  { %321 = vmatprep.subr.bf16.mxu0 %v874_v6  ;;  %v900_v33 = vld [vmem:[#allocation5 + $0xb0] ss:$8 sps:$4 sm:$0xff]   ;;  %v901_v34 = vld [vmem:[#allocation5 + $0xc4] ss:$8 sps:$4 sm:$0xff]   ;;  %v903_v37 = vld [vmem:[#allocation5 + $0xc0] ss:$8 sps:$4 sm:$0xff]  }
  0x44   :  { %v920_v35 = vld [vmem:[#allocation7 + $0x18] sm:$0xff]   ;;  %v921_v36 = vld [vmem:[#allocation7 + $0x60] sm:$0xff]   ;;  %v923_v40 = vld [vmem:[#allocation7 + $0x68] sm:$0xff]  }
  0x45   :  { %794 = vmatpush3.bf16.msra.mxu1 %v916_v27  ;;  %v922_v38 = vld [vmem:[#allocation7 + $0x20] sm:$0xff]   ;;  %v904_v39 = vld [vmem:[#allocation5 + $0xd4] ss:$8 sps:$4 sm:$0xff]   ;;  %v906_v41 = vld [vmem:[#allocation5 + $0xd0] ss:$8 sps:$4 sm:$0xff]  }
  0x46   :  { %322 = vmatpush1.bf16.msra.mxu0 %v876_v7  ;;  %795 = vmatprep.subr.bf16.mxu1 %v917_v28  ;;  %v907_v42 = vld [vmem:[#allocation5 + $0xe4] ss:$8 sps:$4 sm:$0xff]   ;;  %v909_v43 = vld [vmem:[#allocation5 + $0xe0] ss:$8 sps:$4 sm:$0xff]   ;;  %v910_v44 = vld [vmem:[#allocation5 + $0xf4] ss:$8 sps:$4 sm:$0xff]  }
  0x47   :  { %323 = vmatprep.subr.bf16.mxu0 %v877_v8  ;;  %v912_v45 = vld [vmem:[#allocation5 + $0xf0] ss:$8 sps:$4 sm:$0xff]   ;;  %v63_v46 = vld [vmem:[#allocation2] sm:$0xff]  ;;  %v68_v48 = vld [vmem:[#allocation2 + $0x28] sm:$0xff] }
  0x48   :  { %v65_v47 = vld [vmem:[#allocation2 + $0x10] sm:$0xff]  ;;  %v70_v49 = vld [vmem:[#allocation2 + $0x38] sm:$0xff]  ;;  %v67_v52 = vld [vmem:[#allocation2 + $0x20] sm:$0xff] }
  0x49   :  { %796 = vmatpush3.bf16.msra.mxu1 %v918_v31  ;;  %v95_v50 = vpack.c.bf16 %v65_v47, %v63_v46  ;;  %v98_v51 = vpack.c.bf16 %v70_v49, %v68_v48  ;;  %v69_v53 = vld [vmem:[#allocation2 + $0x30] sm:$0xff]  ;;  %v72_v54 = vld [vmem:[#allocation2 + $0x48] sm:$0xff]  ;;  %v74_v55 = vld [vmem:[#allocation2 + $0x58] sm:$0xff] }
  0x4a   :  { %324 = vmatpush1.bf16.msra.mxu0 %v879_v9  ;;  %797 = vmatprep.subr.bf16.mxu1 %v919_v32  ;;  %v97_v56 = vpack.c.bf16 %v69_v53, %v67_v52  ;;  %v100_v57 = vpack.c.bf16 %v74_v55, %v72_v54  ;;  %v71_v58 = vld [vmem:[#allocation2 + $0x40] sm:$0xff]  ;;  %v73_v59 = vld [vmem:[#allocation2 + $0x50] sm:$0xff]  ;;  %v76_v60 = vld [vmem:[#allocation2 + $0x68] sm:$0xff]  ;;  %v145_v32 = vlaneseq }
  0x4b   :  { %325 = vmatprep.subr.bf16.mxu0 %v880_v10  ;;  %v78_v61 = vld [vmem:[#allocation2 + $0x78] sm:$0xff]  ;;  %v99_v62 = vpack.c.bf16 %v73_v59, %v71_v58  ;;  %v75_v0 = vld [vmem:[#allocation2 + $0x60] sm:$0xff]  ;;  %v77_v1 = vld [vmem:[#allocation2 + $0x70] sm:$0xff] }
  0x4c   :  { %v102_v63 = vpack.c.bf16 %v78_v61, %v76_v60  ;;  %v80_v2 = vld [vmem:[#allocation2 + $0x88] sm:$0xff]  ;;  %v82_v3 = vld [vmem:[#allocation2 + $0x98] sm:$0xff]  ;;  %v101_v4 = vpack.c.bf16 %v77_v1, %v75_v0  ;;  %v79_v6 = vld [vmem:[#allocation2 + $0x80] sm:$0xff] }
  0x4d   :  { %798 = vmatpush3.bf16.msra.mxu1 %v920_v35  ;;  %v104_v5 = vpack.c.bf16 %v82_v3, %v80_v2  ;;  %v81_v7 = vld [vmem:[#allocation2 + $0x90] sm:$0xff]  ;;  %v84_v8 = vld [vmem:[#allocation2 + $0xa8] sm:$0xff]  ;;  %v86_v9 = vld [vmem:[#allocation2 + $0xb8] sm:$0xff] }
  0x4e   :  { %326 = vmatpush1.bf16.msra.mxu0 %v882_v11  ;;  %799 = vmatprep.subr.bf16.mxu1 %v921_v36  ;;  %v103_v10 = vpack.c.bf16 %v81_v7, %v79_v6  ;;  %v106_v11 = vpack.c.bf16 %v86_v9, %v84_v8  ;;  %v85_v13 = vld [vmem:[#allocation2 + $0xb0] sm:$0xff]  ;;  %v88_v14 = vld [vmem:[#allocation2 + $0xc8] sm:$0xff]  ;;  %v90_v15 = vld [vmem:[#allocation2 + $0xd8] sm:$0xff] }
  0x4f   :  { %327 = vmatprep.subr.bf16.mxu0 %v883_v12  ;;  %v83_v12 = vld [vmem:[#allocation2 + $0xa0] sm:$0xff]  ;;  %v924_v27 = vld [vmem:[#allocation7 + $0x28] sm:$0xff]   ;;  %v925_v28 = vld [vmem:[#allocation7 + $0x70] sm:$0xff]  }
  0x50   :  { %v91_v24 = vld [vmem:[#allocation2 + $0xe0] sm:$0xff]  ;;  %v928_v31 = vld [vmem:[#allocation7 + $0x38] sm:$0xff]  }
  0x51   :  { %800 = vmatpush3.bf16.msra.mxu1 %v922_v38  ;;  %v143_v35 = vld [vmem:[%s1179_s2] sm:$0x3] }
  0x52   :  { %328 = vmatpush1.bf16.msra.mxu0 %v885_v16  ;;  %801 = vmatprep.subr.bf16.mxu1 %v923_v40  ;;  %v105_v16 = vpack.c.bf16 %v85_v13, %v83_v12 }
  0x53   :  { %329 = vmatprep.subr.bf16.mxu0 %v886_v17  ;;  %v108_v17 = vpack.c.bf16 %v90_v15, %v88_v14 }
  0x55   :  { %802 = vmatpush3.bf16.msra.mxu1 %v924_v27 }
  0x56   :  { %330 = vmatpush1.bf16.msra.mxu0 %v888_v18  ;;  %v87_v18 = vld [vmem:[#allocation2 + $0xc0] sm:$0xff]  ;;  %803 = vmatprep.subr.bf16.mxu1 %v925_v28 }
  0x57   :  { %331 = vmatprep.subr.bf16.mxu0 %v889_v19  ;;  %v89_v19 = vld [vmem:[#allocation2 + $0xd0] sm:$0xff] }
  0x58   :  { %v107_v22 = vpack.c.bf16 %v89_v19, %v87_v18 }
  0x5a   :  { %332 = vmatpush1.bf16.msra.mxu0 %v891_v20  ;;  %v92_v20 = vld [vmem:[#allocation2 + $0xe8] sm:$0xff] }
  0x5b   :  { %333 = vmatprep.subr.bf16.mxu0 %v892_v21  ;;  %v94_v21 = vld [vmem:[#allocation2 + $0xf8] sm:$0xff] }
  0x5e   :  { %334 = vmatpush1.bf16.msra.mxu0 %v894_v23  ;;  %v110_v23 = vpack.c.bf16 %v94_v21, %v92_v20 }
  0x5f   :  { %335 = vmatprep.subr.bf16.mxu0 %v895_v25  ;;  %v93_v25 = vld [vmem:[#allocation2 + $0xf0] sm:$0xff] }
  0x60   :  { %v109_v26 = vpack.c.bf16 %v93_v25, %v91_v24 }
  0x62   :  { %336 = vmatpush1.bf16.msra.mxu0 %v897_v29  ;;  %v926_v29 = vld [vmem:[#allocation7 + $0x30] sm:$0xff]  }
  0x63   :  { %337 = vmatprep.subr.bf16.mxu0 %v898_v30  ;;  %804 = vmatpush3.bf16.msra.mxu1 %v926_v29  ;;  %v927_v30 = vld [vmem:[#allocation7 + $0x78] sm:$0xff]  }
  0x64   :  { %805 = vmatprep.subr.bf16.mxu1 %v927_v30 }
  0x66   :  { %338 = vmatpush1.bf16.msra.mxu0 %v900_v33  ;;  %v146_v33 = vshrl.u32 %v145_v32, 7 }
  0x67   :  { %339 = vmatprep.subr.bf16.mxu0 %v901_v34  ;;  %806 = vmatpush3.bf16.msra.mxu1 %v928_v31 }
  0x68   :  { %v147_v34 = vsub.s32 0, %v146_v33  ;;  %v151_v36 = vsub.s32 1, %v146_v33 }
  0x6a   :  { %340 = vmatpush1.bf16.msra.mxu0 %v903_v37  ;;  %v1105_v37 = vrot.slane %v143_v35, %v147_v34  ;;  %v1107_v38 = vrot.slane %v143_v35, %v151_v36 }
  0x6b   :  { %341 = vmatprep.subr.bf16.mxu0 %v904_v39 }
  0x6e   :  { %342 = vmatpush1.bf16.msra.mxu0 %v906_v41 }
  0x6f   :  { %343 = vmatprep.subr.bf16.mxu0 %v907_v42 }
  0x72   :  { %344 = vmatpush1.bf16.msra.mxu0 %v909_v43 }
  0x73   :  { %345 = vmatprep.subr.bf16.mxu0 %v910_v44 }
  0x76   :  { %346 = vmatpush1.bf16.msra.mxu0 %v912_v45 }
  0x79   :  { %348 = vmatmul.mubr.bf16.vlgmr.msra.gmra.mrb[0].mxu0 %v95_v50 }
  0x7a   :  { %357 = vmatprep.mubr.bf16.mxu0 %v98_v51 }
  0x81   :  { %358 = vmatmul.mubr.bf16.gmra.mrb[4].mxu0 %v97_v56 }
  0x82   :  { %367 = vmatprep.mubr.bf16.mxu0 %v100_v57 }
  0x89   :  { %368 = vmatmul.mubr.bf16.gmra.mrb[8].mxu0 %v99_v62 }
  0x8a   :  { %377 = vmatprep.mubr.bf16.mxu0 %v102_v63 }
  0x91   :  { %378 = vmatmul.mubr.bf16.gmra.mrb[12].mxu0 %v101_v4 }
  0x92   :  { %387 = vmatprep.mubr.bf16.mxu0 %v104_v5 }
  0x99   :  { %388 = vmatmul.mubr.bf16.gmra.mrb[16].mxu0 %v103_v10 }
  0x9a   :  { %397 = vmatprep.mubr.bf16.mxu0 %v106_v11 }
  0xa1   :  { %398 = vmatmul.mubr.bf16.gmra.mrb[20].mxu0 %v105_v16 }
  0xa2   :  { %407 = vmatprep.mubr.bf16.mxu0 %v108_v17 }
  0xa9   :  { %408 = vmatmul.mubr.bf16.gmra.mrb[24].mxu0 %v107_v22 }
  0xaa   :  { %417 = vmatprep.mubr.bf16.mxu0 %v110_v23 }
  0xb1   :  { %418 = vmatmul.mubr.bf16.gmra.mrb[28].mxu0 %v109_v26 }
 0x14c   :  { %v349_v39 = vpop.f32.mrb[0].mxu0 }
 0x14d   :  { %v350_v40 = vadd.f32 %v349_v39, %v1105_v37  ;;  %v351_v41 = vpop.f32.mrb[1].mxu0 }
 0x14e   :  { %v352_v42 = vadd.f32 %v351_v41, %v1107_v38  ;;  %v353_v43 = vpop.f32.mrb[2].mxu0 }
 0x14f   :  { %v354_v44 = vadd.f32 %v353_v43, %v1105_v37  ;;  %v355_v45 = vpop.f32.mrb[3].mxu0  ;;  %v428_v47 = vmax.f32 %v350_v40, 0.0 }
 0x150   :  { %v356_v46 = vadd.f32 %v355_v45, %v1107_v38  ;;  %v429_v49 = vmax.f32 %v352_v42, 0.0 }
 0x151   :  { %v430_v48 = vmax.f32 %v354_v44, 0.0 }
 0x152   :  { %v431_v50 = vmax.f32 %v356_v46, 0.0 }
 0x153   :  { %v460_v51 = vpack.c.bf16 %v430_v48, %v428_v47 }
 0x154   :  { %v359_v52 = vpop.f32.mrb[4].mxu0  ;;  %v461_v53 = vpack.c.bf16 %v431_v50, %v429_v49 }
 0x155   :  { %v360_v54 = vadd.f32 %v359_v52, %v1105_v37  ;;  %v361_v55 = vpop.f32.mrb[5].mxu0 }
 0x156   :  { %v362_v56 = vadd.f32 %v361_v55, %v1107_v38  ;;  %v363_v57 = vpop.f32.mrb[6].mxu0  ;;  %643 = vmatprep.mubr.bf16.mxu1 %v461_v53 }
 0x157   :  { %v364_v58 = vadd.f32 %v363_v57, %v1105_v37  ;;  %v365_v59 = vpop.f32.mrb[7].mxu0  ;;  %644 = vmatmul.mubr.bf16.vlgmr.msra.gmra.mrb[0].mxu1 %v460_v51  ;;  %v432_v61 = vmax.f32 %v360_v54, 0.0 }
 0x158   :  { %v366_v60 = vadd.f32 %v365_v59, %v1107_v38  ;;  %v433_v63 = vmax.f32 %v362_v56, 0.0 }
 0x159   :  { %v434_v62 = vmax.f32 %v364_v58, 0.0 }
 0x15a   :  { %v435_v0 = vmax.f32 %v366_v60, 0.0 }
 0x15b   :  { %v462_v1 = vpack.c.bf16 %v434_v62, %v432_v61 }
 0x15c   :  { %v463_v2 = vpack.c.bf16 %v435_v0, %v433_v63  ;;  %v369_v3 = vpop.f32.mrb[8].mxu0 }
 0x15d   :  { %v370_v4 = vadd.f32 %v369_v3, %v1105_v37  ;;  %v371_v5 = vpop.f32.mrb[9].mxu0 }
 0x15e   :  { %v372_v6 = vadd.f32 %v371_v5, %v1107_v38  ;;  %v373_v7 = vpop.f32.mrb[10].mxu0  ;;  %651 = vmatprep.mubr.bf16.mxu1 %v463_v2 }
 0x15f   :  { %v374_v8 = vadd.f32 %v373_v7, %v1105_v37  ;;  %v375_v9 = vpop.f32.mrb[11].mxu0  ;;  %652 = vmatmul.mubr.bf16.gmra.mrb[4].mxu1 %v462_v1  ;;  %v436_v11 = vmax.f32 %v370_v4, 0.0 }
 0x160   :  { %v376_v10 = vadd.f32 %v375_v9, %v1107_v38  ;;  %v437_v13 = vmax.f32 %v372_v6, 0.0 }
 0x161   :  { %v438_v12 = vmax.f32 %v374_v8, 0.0 }
 0x162   :  { %v439_v14 = vmax.f32 %v376_v10, 0.0 }
 0x163   :  { %v464_v15 = vpack.c.bf16 %v438_v12, %v436_v11 }
 0x164   :  { %v465_v16 = vpack.c.bf16 %v439_v14, %v437_v13  ;;  %v379_v17 = vpop.f32.mrb[12].mxu0 }
 0x165   :  { %v380_v18 = vadd.f32 %v379_v17, %v1105_v37  ;;  %v381_v19 = vpop.f32.mrb[13].mxu0 }
 0x166   :  { %v382_v20 = vadd.f32 %v381_v19, %v1107_v38  ;;  %v383_v21 = vpop.f32.mrb[14].mxu0  ;;  %659 = vmatprep.mubr.bf16.mxu1 %v465_v16 }
 0x167   :  { %v384_v22 = vadd.f32 %v383_v21, %v1105_v37  ;;  %v385_v23 = vpop.f32.mrb[15].mxu0  ;;  %660 = vmatmul.mubr.bf16.gmra.mrb[8].mxu1 %v464_v15  ;;  %v440_v25 = vmax.f32 %v380_v18, 0.0 }
 0x168   :  { %v386_v24 = vadd.f32 %v385_v23, %v1107_v38  ;;  %v441_v27 = vmax.f32 %v382_v20, 0.0 }
 0x169   :  { %v442_v26 = vmax.f32 %v384_v22, 0.0 }
 0x16a   :  { %v443_v28 = vmax.f32 %v386_v24, 0.0 }
 0x16b   :  { %v466_v29 = vpack.c.bf16 %v442_v26, %v440_v25  ;;  %v1144_v26 = vld [vmem:[%s1181_s4] ss:$0 sm:$0xff]  ;;  %s1032_s4 = smov [#allocation8]  }
 0x16c   :  { %v467_v30 = vpack.c.bf16 %v443_v28, %v441_v27  ;;  %v389_v31 = vpop.f32.mrb[16].mxu0  ;;  %s729_s12 = sshll.u32 %s1032_s4, 4  ;;  %s730_s12 = int_to_ptr.vmem [resolvable:$true] %s729_s12 }
 0x16d   :  { %v390_v32 = vadd.f32 %v389_v31, %v1105_v37  ;;  %v391_v33 = vpop.f32.mrb[17].mxu0  ;;  %s995_s13 = scalar_lea.vmem %s730_s12, 2048  ;;  %p1000_p11 = scmp.lt.s32.totalorder %s730_s12, %s730_s12 }
 0x16e   :  { %v392_v34 = vadd.f32 %v391_v33, %v1107_v38  ;;  %v393_v35 = vpop.f32.mrb[18].mxu0  ;;  %667 = vmatprep.mubr.bf16.mxu1 %v467_v30  ;;  %p996_p10 = scmp.ne.s32.totalorder %s730_s12, %s995_s13  ;;  %p1001_p12 = scmp.lt.s32.totalorder %s995_s13, %s995_s13 }
 0x16f   :  { %v394_v36 = vadd.f32 %v393_v35, %v1105_v37  ;;  %v395_v39 = vpop.f32.mrb[19].mxu0  ;;  %668 = vmatmul.mubr.bf16.gmra.mrb[12].mxu1 %v466_v29  ;;  %v444_v41 = vmax.f32 %v390_v32, 0.0 }
 0x170   :  { %v396_v40 = vadd.f32 %v395_v39, %v1107_v38  ;;  %v445_v43 = vmax.f32 %v392_v34, 0.0  ;;  %p1002_p13 = por %p1001_p12, %p1000_p11 }
 0x171   :  { %v446_v42 = vmax.f32 %v394_v36, 0.0 }
 0x172   :  { %v447_v44 = vmax.f32 %v396_v40, 0.0  ;;  %p1003_p0 = pnand %p1002_p13, %p996_p10 }
 0x173   :  { %v468_v45 = vpack.c.bf16 %v446_v42, %v444_v41 }
 0x174   :  { %v469_v46 = vpack.c.bf16 %v447_v44, %v445_v43  ;;  %v399_v47 = vpop.f32.mrb[20].mxu0 }
 0x175   :  { %v400_v48 = vadd.f32 %v399_v47, %v1105_v37  ;;  %v401_v49 = vpop.f32.mrb[21].mxu0 }
 0x176   :  { %v402_v50 = vadd.f32 %v401_v49, %v1107_v38  ;;  %v403_v51 = vpop.f32.mrb[22].mxu0  ;;  %675 = vmatprep.mubr.bf16.mxu1 %v469_v46 }
 0x177   :  { %v404_v52 = vadd.f32 %v403_v51, %v1105_v37  ;;  %v405_v53 = vpop.f32.mrb[23].mxu0  ;;  %676 = vmatmul.mubr.bf16.gmra.mrb[16].mxu1 %v468_v45  ;;  %v448_v55 = vmax.f32 %v400_v48, 0.0 }
 0x178   :  { %v406_v54 = vadd.f32 %v405_v53, %v1107_v38  ;;  %v449_v57 = vmax.f32 %v402_v50, 0.0 }
 0x179   :  { %v450_v56 = vmax.f32 %v404_v52, 0.0 }
 0x17a   :  { %v451_v58 = vmax.f32 %v406_v54, 0.0 }
 0x17b   :  { %v470_v59 = vpack.c.bf16 %v450_v56, %v448_v55 }
 0x17c   :  { %v471_v60 = vpack.c.bf16 %v451_v58, %v449_v57  ;;  %v409_v61 = vpop.f32.mrb[24].mxu0 }
 0x17d   :  { %v410_v62 = vadd.f32 %v409_v61, %v1105_v37  ;;  %v411_v63 = vpop.f32.mrb[25].mxu0 }
 0x17e   :  { %v412_v0 = vadd.f32 %v411_v63, %v1107_v38  ;;  %v413_v1 = vpop.f32.mrb[26].mxu0  ;;  %683 = vmatprep.mubr.bf16.mxu1 %v471_v60 }
 0x17f   :  { %v414_v2 = vadd.f32 %v413_v1, %v1105_v37  ;;  %v415_v3 = vpop.f32.mrb[27].mxu0  ;;  %684 = vmatmul.mubr.bf16.gmra.mrb[20].mxu1 %v470_v59  ;;  %v452_v5 = vmax.f32 %v410_v62, 0.0 }
 0x180   :  { %v416_v4 = vadd.f32 %v415_v3, %v1107_v38  ;;  %v453_v7 = vmax.f32 %v412_v0, 0.0 }
 0x181   :  { %v454_v6 = vmax.f32 %v414_v2, 0.0 }
 0x182   :  { %v455_v8 = vmax.f32 %v416_v4, 0.0 }
 0x183   :  { %v472_v9 = vpack.c.bf16 %v454_v6, %v452_v5 }
 0x184   :  { %v473_v10 = vpack.c.bf16 %v455_v8, %v453_v7  ;;  %v419_v11 = vpop.f32.mrb[28].mxu0 }
 0x185   :  { %v420_v12 = vadd.f32 %v419_v11, %v1105_v37  ;;  %v421_v13 = vpop.f32.mrb[29].mxu0 }
 0x186   :  { %v422_v14 = vadd.f32 %v421_v13, %v1107_v38  ;;  %v423_v15 = vpop.f32.mrb[30].mxu0  ;;  %691 = vmatprep.mubr.bf16.mxu1 %v473_v10 }
 0x187   :  { %v424_v16 = vadd.f32 %v423_v15, %v1105_v37  ;;  %v425_v17 = vpop.f32.mrb[31].mxu0  ;;  %692 = vmatmul.mubr.bf16.gmra.mrb[24].mxu1 %v472_v9  ;;  %v456_v19 = vmax.f32 %v420_v12, 0.0 }
 0x188   :  { %v426_v18 = vadd.f32 %v425_v17, %v1107_v38  ;;  %v457_v21 = vmax.f32 %v422_v14, 0.0 }
 0x189   :  { %v458_v20 = vmax.f32 %v424_v16, 0.0 }
 0x18a   :  { %v459_v22 = vmax.f32 %v426_v18, 0.0 }
 0x18b   :  { %v474_v23 = vpack.c.bf16 %v458_v20, %v456_v19 }
 0x18c   :  { %v475_v24 = vpack.c.bf16 %v459_v22, %v457_v21 }
 0x18e   :  { %699 = vmatprep.mubr.bf16.mxu1 %v475_v24 }
 0x18f   :  { %700 = vmatmul.mubr.bf16.gmra.mrb[28].mxu1 %v474_v23 }
 0x22a   :  { %v807_v25 = vpop.f32.mrb[0].mxu1 }
 0x22b   :  { %v808_v27 = vpop.f32.mrb[1].mxu1 }
 0x22c   :  { %v809_v37 = vadd.f32 %v808_v27, %v807_v25  ;;  %v810_v28 = vpop.f32.mrb[2].mxu1 }
 0x22d   :  { %v811_v29 = vpop.f32.mrb[3].mxu1 }
 0x22e   :  { %v646_v38 = vadd.f32 %v809_v37, %v1144_v26  ;;  %v812_v30 = vadd.f32 %v811_v29, %v810_v28 }
 0x230   :  { %708 = vst [vmem:[#allocation8] sm:$0xff] %v646_v38  ;;  %v649_v31 = vadd.f32 %v812_v30, %v1144_v26 }
 0x232   :  { %709 = vst [vmem:[#allocation8 + $0x8] sm:$0xff] %v649_v31  ;;  %v813_v32 = vpop.f32.mrb[4].mxu1 }
 0x233   :  { %v814_v33 = vpop.f32.mrb[5].mxu1 }
 0x234   :  { %v815_v34 = vadd.f32 %v814_v33, %v813_v32  ;;  %v816_v35 = vpop.f32.mrb[6].mxu1 }
 0x235   :  { %v817_v36 = vpop.f32.mrb[7].mxu1 }
 0x236   :  { %v654_v39 = vadd.f32 %v815_v34, %v1144_v26  ;;  %v818_v40 = vadd.f32 %v817_v36, %v816_v35 }
 0x238   :  { %710 = vst [vmem:[#allocation8 + $0x10] sm:$0xff] %v654_v39  ;;  %v657_v41 = vadd.f32 %v818_v40, %v1144_v26 }
 0x23a   :  { %711 = vst [vmem:[#allocation8 + $0x18] sm:$0xff] %v657_v41  ;;  %v819_v42 = vpop.f32.mrb[8].mxu1 }
 0x23b   :  { %v820_v43 = vpop.f32.mrb[9].mxu1 }
 0x23c   :  { %v821_v44 = vadd.f32 %v820_v43, %v819_v42  ;;  %v822_v45 = vpop.f32.mrb[10].mxu1 }
 0x23d   :  { %v823_v46 = vpop.f32.mrb[11].mxu1 }
 0x23e   :  { %v662_v47 = vadd.f32 %v821_v44, %v1144_v26  ;;  %v824_v48 = vadd.f32 %v823_v46, %v822_v45 }
 0x240   :  { %712 = vst [vmem:[#allocation8 + $0x20] sm:$0xff] %v662_v47  ;;  %v665_v49 = vadd.f32 %v824_v48, %v1144_v26 }
 0x242   :  { %713 = vst [vmem:[#allocation8 + $0x28] sm:$0xff] %v665_v49  ;;  %v825_v50 = vpop.f32.mrb[12].mxu1 }
 0x243   :  { %v826_v51 = vpop.f32.mrb[13].mxu1 }
 0x244   :  { %v827_v52 = vadd.f32 %v826_v51, %v825_v50  ;;  %v828_v53 = vpop.f32.mrb[14].mxu1 }
 0x245   :  { %v829_v54 = vpop.f32.mrb[15].mxu1 }
 0x246   :  { %v670_v55 = vadd.f32 %v827_v52, %v1144_v26  ;;  %v830_v56 = vadd.f32 %v829_v54, %v828_v53 }
 0x248   :  { %714 = vst [vmem:[#allocation8 + $0x30] sm:$0xff] %v670_v55  ;;  %v673_v57 = vadd.f32 %v830_v56, %v1144_v26 }
 0x24a   :  { %715 = vst [vmem:[#allocation8 + $0x38] sm:$0xff] %v673_v57  ;;  %v831_v58 = vpop.f32.mrb[16].mxu1 }
 0x24b   :  { %v832_v59 = vpop.f32.mrb[17].mxu1 }
 0x24c   :  { %v833_v60 = vadd.f32 %v832_v59, %v831_v58  ;;  %v834_v61 = vpop.f32.mrb[18].mxu1 }
 0x24d   :  { %v835_v62 = vpop.f32.mrb[19].mxu1 }
 0x24e   :  { %v678_v63 = vadd.f32 %v833_v60, %v1144_v26  ;;  %v836_v0 = vadd.f32 %v835_v62, %v834_v61 }
 0x250   :  { %716 = vst [vmem:[#allocation8 + $0x40] sm:$0xff] %v678_v63  ;;  %v681_v1 = vadd.f32 %v836_v0, %v1144_v26 }
 0x252   :  { %717 = vst [vmem:[#allocation8 + $0x48] sm:$0xff] %v681_v1  ;;  %v837_v2 = vpop.f32.mrb[20].mxu1 }
 0x253   :  { %v838_v3 = vpop.f32.mrb[21].mxu1 }
 0x254   :  { %v839_v4 = vadd.f32 %v838_v3, %v837_v2  ;;  %v840_v5 = vpop.f32.mrb[22].mxu1 }
 0x255   :  { %v841_v6 = vpop.f32.mrb[23].mxu1 }
 0x256   :  { %v686_v7 = vadd.f32 %v839_v4, %v1144_v26  ;;  %v842_v8 = vadd.f32 %v841_v6, %v840_v5 }
 0x258   :  { %718 = vst [vmem:[#allocation8 + $0x50] sm:$0xff] %v686_v7  ;;  %v689_v9 = vadd.f32 %v842_v8, %v1144_v26 }
 0x25a   :  { %719 = vst [vmem:[#allocation8 + $0x58] sm:$0xff] %v689_v9  ;;  %v843_v10 = vpop.f32.mrb[24].mxu1 }
 0x25b   :  { %v844_v11 = vpop.f32.mrb[25].mxu1 }
 0x25c   :  { %v845_v12 = vadd.f32 %v844_v11, %v843_v10  ;;  %v846_v13 = vpop.f32.mrb[26].mxu1 }
 0x25d   :  { %v847_v14 = vpop.f32.mrb[27].mxu1 }
 0x25e   :  { %v694_v15 = vadd.f32 %v845_v12, %v1144_v26  ;;  %v848_v16 = vadd.f32 %v847_v14, %v846_v13 }
 0x260   :  { %720 = vst [vmem:[#allocation8 + $0x60] sm:$0xff] %v694_v15  ;;  %v697_v17 = vadd.f32 %v848_v16, %v1144_v26 }
 0x262   :  { %721 = vst [vmem:[#allocation8 + $0x68] sm:$0xff] %v697_v17  ;;  %v849_v18 = vpop.f32.mrb[28].mxu1 }
 0x263   :  { %v850_v19 = vpop.f32.mrb[29].mxu1 }
 0x264   :  { %v851_v20 = vadd.f32 %v850_v19, %v849_v18  ;;  %v852_v21 = vpop.f32.mrb[30].mxu1 }
 0x265   :  { %v853_v22 = vpop.f32.mrb[31].mxu1 }
 0x266   :  { %v702_v23 = vadd.f32 %v851_v20, %v1144_v26  ;;  %v854_v24 = vadd.f32 %v853_v22, %v852_v21 }
 0x268   :  { %722 = vst [vmem:[#allocation8 + $0x70] sm:$0xff] %v702_v23  ;;  %v705_v25 = vadd.f32 %v854_v24, %v1144_v26 }
 0x26a   :  { %723 = vst [vmem:[#allocation8 + $0x78] sm:$0xff] %v705_v25 }
 0x26b   :  { %1006 = shalt.err (!%p1003_p0)
}
 0x26c   :  { %s1007_s16 = scalar_lea.hbm %s1182_s5, 2048 }
 0x26d   :  { %p1008_p1 = scmp.ne.s32.totalorder %s1182_s5, %s1007_s16  ;;  %p1011_p2 = scmp.lt.u32.totalorder %s1007_s16, %s1182_s5 }
 0x26f   :  { %p1013_p3 = pnand %p1011_p2, %p1008_p1 }
 0x271   :  { %1016 = shalt.err (!%p1013_p3)
}
 0x272   :  { %735 = dma.vmem_to_hbm [thread:$0]  %s730_s12, 2048, %s1182_s5, [#allocation4], %s1024_s28, %s1024_s28, %s1025_s29  }
 0x273   :  { %1021 = dma.done.wait [#allocation4], 2048  }
 0x274   :  { %1022 = vsyncadd [#allocation4], 4294965248 }
 0x275   :  { %739 = vsyncpa [#allocation3], 1 }
 0x276   :  { %740 = vsyncpa [#allocation6], 1 }
 0x277   :  { %741 = vsyncpa [#allocation4], 1 }

</bundles_post_ra>
